<compile_context>
chip_gen: v5e
topology: v5e:2x2
jax: 0.10.0
libtpu: 0.0.40
codegen_flags: <defaults>
</compile_context>

<pallas_src>
import functools
import math

import jax
import jax.numpy as jnp
from jax.experimental import pallas as pl
from jax.experimental.pallas import tpu as pltpu

_LANES = 128
_SUBLANES_BF16 = 16   # full bf16 sublane packing on the MXU LHS


def _round_up(v, m):
    return (v + m - 1) // m * m


def _vmem_full(shape):
    # grid=() -> index_map takes no args; whole (padded, lane-aligned) array
    # is VMEM-resident.
    return pl.BlockSpec(shape, lambda: tuple(0 for _ in shape),
                        memory_space=pltpu.MemorySpace.VMEM)


# ---------------------------------------------------------------------------
# Kernel: fused forward over the whole GRU-cell stack.
# refs layout: x, h0_0..h0_{n-1}, wx_0.., wh_0.., b3_0.., bhn_0.., out_0..
# ---------------------------------------------------------------------------
def _multi_gru_stack_kernel(h_pads, *refs):
    n = len(h_pads)                    # h_pads: static per-cell padded H
    x_ref = refs[0]
    h_refs = refs[1:1 + n]
    wx_refs = refs[1 + n:1 + 2 * n]
    wh_refs = refs[1 + 2 * n:1 + 3 * n]
    b3_refs = refs[1 + 3 * n:1 + 4 * n]
    bhn_refs = refs[1 + 4 * n:1 + 5 * n]
    out_refs = refs[1 + 5 * n:1 + 6 * n]

    x_bf = x_ref[...]                  # bf16 MXU operand (cast in wrapper)
    for i, hp in enumerate(h_pads):
        h = h_refs[i][...]             # f32 (blend precision)

        # Two lane-dense matmuls: bf16 operands, f32 accumulation.  No [x|h]
        # scratch slab; gate slabs land on 128-lane boundaries.
        gx = jnp.dot(x_bf, wx_refs[i][...],
                     preferred_element_type=jnp.float32) + b3_refs[i][...]
        gh = jnp.dot(h.astype(jnp.bfloat16), wh_refs[i][...],
                     preferred_element_type=jnp.float32)

        # torch.nn.GRUCell gate order [r, z, n]; n-gate keeps b_hn separate
        # because of the r * (W_hn h + b_hn) coupling.
        r = jax.nn.sigmoid(gx[:, 0:hp] + gh[:, 0:hp])
        z = jax.nn.sigmoid(gx[:, hp:2 * hp] + gh[:, hp:2 * hp])
        ngate = jnp.tanh(gx[:, 2 * hp:3 * hp] +
                         r * (gh[:, 2 * hp:3 * hp] + bhn_refs[i][...]))
        new_h = ngate + z * (h - ngate)          # == (1-z)*n + z*h

        out_refs[i][...] = new_h.astype(out_refs[i].dtype)
        if i + 1 < n:
            x_bf = new_h.astype(jnp.bfloat16)    # next cell's MXU input


# ---------------------------------------------------------------------------
# Parameter handling (mirrors torch.nn.GRUCell layout + init)
# ---------------------------------------------------------------------------
def init_multi_gru_params(key, input_size, hidden_sizes):
    """torch.nn.GRUCell params: weight_ih (3H, In), weight_hh (3H, H),
    bias_ih (3H,), bias_hh (3H,), init U(-1/sqrt(H), 1/sqrt(H))."""
    params = []
    in_size = input_size
    for H in hidden_sizes:
        key, k1, k2, k3, k4 = jax.random.split(key, 5)
        bound = 1.0 / math.sqrt(H)
        params.append(dict(
            weight_ih=jax.random.uniform(k1, (3 * H, in_size), jnp.float32,
                                         -bound, bound),
            weight_hh=jax.random.uniform(k2, (3 * H, H), jnp.float32,
                                         -bound, bound),
            bias_ih=jax.random.uniform(k3, (3 * H,), jnp.float32, -bound, bound),
            bias_hh=jax.random.uniform(k4, (3 * H,), jnp.float32, -bound, bound),
        ))
        in_size = H
    return params


def pack_multi_gru_params(params, input_size, weight_dtype=jnp.bfloat16):
    """Pack per-cell weights into two lane-dense matrices (x-side / h-side)."""
    packed = []
    in_size = input_size
    for p in params:
        wih, whh = p["weight_ih"], p["weight_hh"]
        bih, bhh = p["bias_ih"], p["bias_hh"]
        H = whh.shape[1]
        In = in_size
        in_pad = _round_up(In, _LANES)
        h_pad = _round_up(H, _LANES)

        wx = jnp.zeros((in_pad, 3 * h_pad), jnp.float32)   # slabs [r | z | n_x]
        wh = jnp.zeros((h_pad, 3 * h_pad), jnp.float32)    # slabs [r | z | n_h]
        for g in range(3):                                  # torch order [r,z,n]
            wx = wx.at[0:In, g * h_pad:g * h_pad + H].set(
                wih[g * H:(g + 1) * H, :].T)
            wh = wh.at[0:H, g * h_pad:g * h_pad + H].set(
                whh[g * H:(g + 1) * H, :].T)

        b3 = jnp.zeros((1, 3 * h_pad), jnp.float32)
        b3 = b3.at[0, 0:H].set(bih[0:H] + bhh[0:H])                       # r
        b3 = b3.at[0, h_pad:h_pad + H].set(bih[H:2 * H] + bhh[H:2 * H])   # z
        b3 = b3.at[0, 2 * h_pad:2 * h_pad + H].set(bih[2 * H:3 * H])      # n_x
        bhn = jnp.zeros((1, h_pad), jnp.float32)
        bhn = bhn.at[0, 0:H].set(bhh[2 * H:3 * H])                        # n_h

        packed.append(dict(wx=wx.astype(weight_dtype),
                           wh=wh.astype(weight_dtype),
                           b3=b3, bhn=bhn, hidden=H, in_size=In,
                           in_pad=in_pad, h_pad=h_pad))
        in_size = H
    return packed


# ---------------------------------------------------------------------------
# Fused forward (single pallas_call for the whole stack)
# ---------------------------------------------------------------------------
@functools.partial(jax.jit, static_argnames=("out_dtype",))
def _fused_forward(x_pad, hs, wxs, whs, b3s, bhns, out_dtype=jnp.float32):
    b_pad = x_pad.shape[0]
    h_pads = tuple(wh.shape[0] for wh in whs)

    out_shapes = [jax.ShapeDtypeStruct((b_pad, hp), out_dtype) for hp in h_pads]
    in_arrays = ((x_pad,) + tuple(hs) + tuple(wxs) + tuple(whs)
                 + tuple(b3s) + tuple(bhns))
    in_specs = [_vmem_full(a.shape) for a in in_arrays]
    out_specs = [_vmem_full(s.shape) for s in out_shapes]

    # Roofline hints + VMEM sizing (whole stack is VMEM-resident here).
    flops = 0
    transcendentals = 0
    bytes_accessed = 0
    for wx, wh, hp in zip(wxs, whs, h_pads):
        flops += 2 * b_pad * (wx.shape[0] + wh.shape[0]) * (3 * hp)
        transcendentals += 3 * b_pad * hp
    for a in in_arrays:
        bytes_accessed += a.size * a.dtype.itemsize
    for s in out_shapes:
        bytes_accessed += s.size * jnp.dtype(out_dtype).itemsize
    vmem_limit = int(min(128 * 2**20,
                         max(32 * 2**20, 2 * bytes_accessed + 4 * 2**20)))

    return pl.pallas_call(
        functools.partial(_multi_gru_stack_kernel, h_pads),
        grid=(),
        out_shape=out_shapes,
        in_specs=in_specs,
        out_specs=out_specs,
        compiler_params=pltpu.CompilerParams(vmem_limit_bytes=vmem_limit),
        cost_estimate=pl.CostEstimate(flops=int(flops),
                                      transcendentals=int(transcendentals),
                                      bytes_accessed=int(bytes_accessed)),
    )(*in_arrays)


def multi_gru_cell(x, packed, hx=None):
    """Forward pass of MultiGRUCell: returns list of per-cell hidden states."""
    B = x.shape[0]
    b_pad = _round_up(max(B, _SUBLANES_BF16), _SUBLANES_BF16)

    # Pad + cast the input once (bf16 MXU operand).  NOTE: in a real model,
    # keep activations in this padded layout across calls to avoid the
    # pad/slice XLA kernels dominating single-step cost.
    x_pad = jnp.pad(x.astype(jnp.bfloat16),
                    ((0, b_pad - B), (0, packed[0]["in_pad"] - x.shape[1])))

    hs = []
    for i, p in enumerate(packed):
        if hx is not None and hx[i] is not None:
            h0 = jnp.pad(hx[i].astype(jnp.float32),
                         ((0, b_pad - B), (0, p["h_pad"] - p["hidden"])))
        else:
            h0 = jnp.zeros((b_pad, p["h_pad"]), jnp.float32)
        hs.append(h0)

    outs = _fused_forward(x_pad, tuple(hs),
                          tuple(p["wx"] for p in packed),
                          tuple(p["wh"] for p in packed),
                          tuple(p["b3"] for p in packed),
                          tuple(p["bhn"] for p in packed),
                          out_dtype=jnp.float32)
    return [o[:B, :p["hidden"]].astype(x.dtype) for o, p in zip(outs, packed)]


# ---------------------------------------------------------------------------
# Pure-JAX reference (exact torch.nn.GRUCell math, f32 weights)
# ---------------------------------------------------------------------------
def _reference_gru_cell(x, h, wih, whh, bih, bhh):
    gi = x @ wih.T + bih
    gh = h @ whh.T + bhh
    H = h.shape[1]
    r = jax.nn.sigmoid(gi[:, :H] + gh[:, :H])
    z = jax.nn.sigmoid(gi[:, H:2 * H] + gh[:, H:2 * H])
    n = jnp.tanh(gi[:, 2 * H:] + r * gh[:, 2 * H:])
    return (1.0 - z) * n + z * h


if __name__ == "__main__":
    key = jax.random.PRNGKey(0)
    batch = 2
    input_size = 32
    hidden_sizes = (32, 16)

    key, kx, kp = jax.random.split(key, 3)
    x = jax.random.normal(kx, (batch, input_size), jnp.float32)
    params = init_multi_gru_params(kp, input_size, hidden_sizes)
    packed = pack_multi_gru_params(params, input_size)   # bf16 weights

    states = multi_gru_cell(x, packed, hx=None)
    states = [jax.block_until_ready(s) for s in states]

    # Cross-check against a pure-f32 reference (kernel uses bf16 operands on
    # the MXU with f32 accumulation -> allow a few e-3 of matmul rounding,
    # compounding with stack depth).
    xi = x
    for i, p in enumerate(params):
        hi = jnp.zeros((batch, hidden_sizes[i]), jnp.float32)
        xi = _reference_gru_cell(xi, hi, p["weight_ih"], p["weight_hh"],
                                 p["bias_ih"], p["bias_hh"])
        assert states[i].shape == (batch, hidden_sizes[i])
        assert jnp.allclose(states[i], xi, atol=3e-2, rtol=3e-2), (
            f"cell {i} max abs err "
            f"{float(jnp.max(jnp.abs(states[i] - xi))):.4e}")

    print("KERNEL_OK")
</pallas_src>

<mosaic_0001>
module attributes {stable_mosaic.version = 11 : i64} {
  func.func @_multi_gru_stack_kernel(%arg0: memref<16x128xbf16, #tpu.memory_space<vmem>>, %arg1: memref<16x128xf32, #tpu.memory_space<vmem>>, %arg2: memref<16x128xf32, #tpu.memory_space<vmem>>, %arg3: memref<128x384xbf16, #tpu.memory_space<vmem>>, %arg4: memref<128x384xbf16, #tpu.memory_space<vmem>>, %arg5: memref<128x384xbf16, #tpu.memory_space<vmem>>, %arg6: memref<128x384xbf16, #tpu.memory_space<vmem>>, %arg7: memref<1x384xf32, #tpu.memory_space<vmem>>, %arg8: memref<1x384xf32, #tpu.memory_space<vmem>>, %arg9: memref<1x128xf32, #tpu.memory_space<vmem>>, %arg10: memref<1x128xf32, #tpu.memory_space<vmem>>, %arg11: memref<16x128xf32, #tpu.memory_space<vmem>>, %arg12: memref<16x128xf32, #tpu.memory_space<vmem>>) attributes {dimension_semantics = [], scalar_prefetch = 0 : i64, scratch_operands = 0 : i64, tpu.core_type = #tpu.core_type<tc>} {
    %c0 = arith.constant 0 : index
    %c0_0 = arith.constant 0 : index
    %0 = vector.load %arg0[%c0, %c0_0] : memref<16x128xbf16, #tpu.memory_space<vmem>>, vector<16x128xbf16>
    %c0_1 = arith.constant 0 : index
    %c0_2 = arith.constant 0 : index
    %1 = vector.load %arg1[%c0_1, %c0_2] : memref<16x128xf32, #tpu.memory_space<vmem>>, vector<16x128xf32>
    %c0_3 = arith.constant 0 : index
    %c0_4 = arith.constant 0 : index
    %2 = vector.load %arg3[%c0_3, %c0_4] : memref<128x384xbf16, #tpu.memory_space<vmem>>, vector<128x384xbf16>
    %cst = arith.constant dense<0.000000e+00> : vector<16x384xf32>
    %3 = tpu.matmul %0, %2, %cst {dimension_numbers = #tpu.dot_dimension_numbers<[1], [0], [0], [1], [0, 0, 1, 1], [], []>} : vector<16x128xbf16>, vector<128x384xbf16>, vector<16x384xf32> -> vector<16x384xf32>
    %c0_5 = arith.constant 0 : index
    %c0_6 = arith.constant 0 : index
    %4 = vector.load %arg7[%c0_5, %c0_6] : memref<1x384xf32, #tpu.memory_space<vmem>>, vector<1x384xf32>
    %5 = vector.broadcast %4 : vector<1x384xf32> to vector<16x384xf32>
    %6 = arith.addf %3, %5 : vector<16x384xf32>
    %7 = arith.truncf %1 : vector<16x128xf32> to vector<16x128xbf16>
    %c0_7 = arith.constant 0 : index
    %c0_8 = arith.constant 0 : index
    %8 = vector.load %arg5[%c0_7, %c0_8] : memref<128x384xbf16, #tpu.memory_space<vmem>>, vector<128x384xbf16>
    %cst_9 = arith.constant dense<0.000000e+00> : vector<16x384xf32>
    %9 = tpu.matmul %7, %8, %cst_9 {dimension_numbers = #tpu.dot_dimension_numbers<[1], [0], [0], [1], [0, 0, 1, 1], [], []>} : vector<16x128xbf16>, vector<128x384xbf16>, vector<16x384xf32> -> vector<16x384xf32>
    %10 = vector.extract_strided_slice %6 {offsets = [0, 0], sizes = [16, 128], strides = [1, 1]} : vector<16x384xf32> to vector<16x128xf32>
    %11 = vector.extract_strided_slice %9 {offsets = [0, 0], sizes = [16, 128], strides = [1, 1]} : vector<16x384xf32> to vector<16x128xf32>
    %12 = arith.addf %10, %11 : vector<16x128xf32>
    %13 = arith.negf %12 : vector<16x128xf32>
    %14 = math.exp %13 : vector<16x128xf32>
    %cst_10 = arith.constant 1.000000e+00 : f32
    %15 = vector.broadcast %cst_10 : f32 to vector<16x128xf32>
    %16 = arith.addf %15, %14 : vector<16x128xf32>
    %17 = arith.divf %15, %16 : vector<16x128xf32>
    %18 = vector.extract_strided_slice %6 {offsets = [0, 128], sizes = [16, 128], strides = [1, 1]} : vector<16x384xf32> to vector<16x128xf32>
    %19 = vector.extract_strided_slice %9 {offsets = [0, 128], sizes = [16, 128], strides = [1, 1]} : vector<16x384xf32> to vector<16x128xf32>
    %20 = arith.addf %18, %19 : vector<16x128xf32>
    %21 = arith.negf %20 : vector<16x128xf32>
    %22 = math.exp %21 : vector<16x128xf32>
    %cst_11 = arith.constant 1.000000e+00 : f32
    %23 = vector.broadcast %cst_11 : f32 to vector<16x128xf32>
    %24 = arith.addf %23, %22 : vector<16x128xf32>
    %25 = arith.divf %23, %24 : vector<16x128xf32>
    %26 = vector.extract_strided_slice %6 {offsets = [0, 256], sizes = [16, 128], strides = [1, 1]} : vector<16x384xf32> to vector<16x128xf32>
    %27 = vector.extract_strided_slice %9 {offsets = [0, 256], sizes = [16, 128], strides = [1, 1]} : vector<16x384xf32> to vector<16x128xf32>
    %c0_12 = arith.constant 0 : index
    %c0_13 = arith.constant 0 : index
    %28 = vector.load %arg9[%c0_12, %c0_13] : memref<1x128xf32, #tpu.memory_space<vmem>>, vector<1x128xf32>
    %29 = vector.broadcast %28 : vector<1x128xf32> to vector<16x128xf32>
    %30 = arith.addf %27, %29 : vector<16x128xf32>
    %31 = arith.mulf %17, %30 : vector<16x128xf32>
    %32 = arith.addf %26, %31 : vector<16x128xf32>
    %33 = math.tanh %32 : vector<16x128xf32>
    %34 = arith.subf %1, %33 : vector<16x128xf32>
    %35 = arith.mulf %25, %34 : vector<16x128xf32>
    %36 = arith.addf %33, %35 : vector<16x128xf32>
    %c0_14 = arith.constant 0 : index
    %c0_15 = arith.constant 0 : index
    %37 = vector.load %arg11[%c0_14, %c0_15] : memref<16x128xf32, #tpu.memory_space<vmem>>, vector<16x128xf32>
    tpu.vector_store %arg11[%c0_14, %c0_15], %36 {strides = array<i32>} : memref<16x128xf32, #tpu.memory_space<vmem>>, vector<16x128xf32>,
    %38 = arith.truncf %36 : vector<16x128xf32> to vector<16x128xbf16>
    %c0_16 = arith.constant 0 : index
    %c0_17 = arith.constant 0 : index
    %39 = vector.load %arg2[%c0_16, %c0_17] : memref<16x128xf32, #tpu.memory_space<vmem>>, vector<16x128xf32>
    %c0_18 = arith.constant 0 : index
    %c0_19 = arith.constant 0 : index
    %40 = vector.load %arg4[%c0_18, %c0_19] : memref<128x384xbf16, #tpu.memory_space<vmem>>, vector<128x384xbf16>
    %cst_20 = arith.constant dense<0.000000e+00> : vector<16x384xf32>
    %41 = tpu.matmul %38, %40, %cst_20 {dimension_numbers = #tpu.dot_dimension_numbers<[1], [0], [0], [1], [0, 0, 1, 1], [], []>} : vector<16x128xbf16>, vector<128x384xbf16>, vector<16x384xf32> -> vector<16x384xf32>
    %c0_21 = arith.constant 0 : index
    %c0_22 = arith.constant 0 : index
    %42 = vector.load %arg8[%c0_21, %c0_22] : memref<1x384xf32, #tpu.memory_space<vmem>>, vector<1x384xf32>
    %43 = vector.broadcast %42 : vector<1x384xf32> to vector<16x384xf32>
    %44 = arith.addf %41, %43 : vector<16x384xf32>
    %45 = arith.truncf %39 : vector<16x128xf32> to vector<16x128xbf16>
    %c0_23 = arith.constant 0 : index
    %c0_24 = arith.constant 0 : index
    %46 = vector.load %arg6[%c0_23, %c0_24] : memref<128x384xbf16, #tpu.memory_space<vmem>>, vector<128x384xbf16>
    %cst_25 = arith.constant dense<0.000000e+00> : vector<16x384xf32>
    %47 = tpu.matmul %45, %46, %cst_25 {dimension_numbers = #tpu.dot_dimension_numbers<[1], [0], [0], [1], [0, 0, 1, 1], [], []>} : vector<16x128xbf16>, vector<128x384xbf16>, vector<16x384xf32> -> vector<16x384xf32>
    %48 = vector.extract_strided_slice %44 {offsets = [0, 0], sizes = [16, 128], strides = [1, 1]} : vector<16x384xf32> to vector<16x128xf32>
    %49 = vector.extract_strided_slice %47 {offsets = [0, 0], sizes = [16, 128], strides = [1, 1]} : vector<16x384xf32> to vector<16x128xf32>
    %50 = arith.addf %48, %49 : vector<16x128xf32>
    %51 = arith.negf %50 : vector<16x128xf32>
    %52 = math.exp %51 : vector<16x128xf32>
    %cst_26 = arith.constant 1.000000e+00 : f32
    %53 = vector.broadcast %cst_26 : f32 to vector<16x128xf32>
    %54 = arith.addf %53, %52 : vector<16x128xf32>
    %55 = arith.divf %53, %54 : vector<16x128xf32>
    %56 = vector.extract_strided_slice %44 {offsets = [0, 128], sizes = [16, 128], strides = [1, 1]} : vector<16x384xf32> to vector<16x128xf32>
    %57 = vector.extract_strided_slice %47 {offsets = [0, 128], sizes = [16, 128], strides = [1, 1]} : vector<16x384xf32> to vector<16x128xf32>
    %58 = arith.addf %56, %57 : vector<16x128xf32>
    %59 = arith.negf %58 : vector<16x128xf32>
    %60 = math.exp %59 : vector<16x128xf32>
    %cst_27 = arith.constant 1.000000e+00 : f32
    %61 = vector.broadcast %cst_27 : f32 to vector<16x128xf32>
    %62 = arith.addf %61, %60 : vector<16x128xf32>
    %63 = arith.divf %61, %62 : vector<16x128xf32>
    %64 = vector.extract_strided_slice %44 {offsets = [0, 256], sizes = [16, 128], strides = [1, 1]} : vector<16x384xf32> to vector<16x128xf32>
    %65 = vector.extract_strided_slice %47 {offsets = [0, 256], sizes = [16, 128], strides = [1, 1]} : vector<16x384xf32> to vector<16x128xf32>
    %c0_28 = arith.constant 0 : index
    %c0_29 = arith.constant 0 : index
    %66 = vector.load %arg10[%c0_28, %c0_29] : memref<1x128xf32, #tpu.memory_space<vmem>>, vector<1x128xf32>
    %67 = vector.broadcast %66 : vector<1x128xf32> to vector<16x128xf32>
    %68 = arith.addf %65, %67 : vector<16x128xf32>
    %69 = arith.mulf %55, %68 : vector<16x128xf32>
    %70 = arith.addf %64, %69 : vector<16x128xf32>
    %71 = math.tanh %70 : vector<16x128xf32>
    %72 = arith.subf %39, %71 : vector<16x128xf32>
    %73 = arith.mulf %63, %72 : vector<16x128xf32>
    %74 = arith.addf %71, %73 : vector<16x128xf32>
    %c0_30 = arith.constant 0 : index
    %c0_31 = arith.constant 0 : index
    %75 = vector.load %arg12[%c0_30, %c0_31] : memref<16x128xf32, #tpu.memory_space<vmem>>, vector<16x128xf32>
    tpu.vector_store %arg12[%c0_30, %c0_31], %74 {strides = array<i32>} : memref<16x128xf32, #tpu.memory_space<vmem>>, vector<16x128xf32>,
    return
  }
}

</mosaic_0001>

<bundles_post_ra>
// kernel: _fused_forward.1
= control target key start
LH: loop header
LB: loop body
LE: loop exit
PB: predicated region body
PF: predicated region fallthrough
CT: control target
= control target key end

     0   :  { %18 = vsyncpa [#allocation3], 0  ;;  %s2260_s0 = inlined_call_operand.hbm [shape: bf16[16,128], index: 0, kind: input, shape index: {}]   ;;  %s2261_s1 = inlined_call_operand.hbm [shape: f32[16,128], index: 1, kind: input, shape index: {}]   ;;  %s2262_s2 = inlined_call_operand.hbm [shape: f32[16,128], index: 2, kind: input, shape index: {}]   ;;  %s2263_s3 = inlined_call_operand.hbm [shape: bf16[128,384], index: 3, kind: input, shape index: {}]   ;;  %s2264_s4 = inlined_call_operand.hbm [shape: bf16[128,384], index: 4, kind: input, shape index: {}]   ;;  %s2265_s5 = inlined_call_operand.hbm [shape: bf16[128,384], index: 5, kind: input, shape index: {}]   ;;  %s2266_s6 = inlined_call_operand.hbm [shape: bf16[128,384], index: 6, kind: input, shape index: {}]   ;;  %s2267_s7 = inlined_call_operand.vmem [shape: f32[1,384], index: 7, kind: input, shape index: {}]   ;;  %s2268_s8 = inlined_call_operand.vmem [shape: f32[1,384], index: 8, kind: input, shape index: {}]   ;;  %s2269_s9 = inlined_call_operand.vmem [shape: f32[1,128], index: 9, kind: input, shape index: {}]   ;;  %s2270_s10 = inlined_call_operand.vmem [shape: f32[1,128], index: 10, kind: input, shape index: {}]   ;;  %s2271_s11 = inlined_call_operand.hbm [shape: f32[16,128], index: 11, kind: output, shape index: {0}]   ;;  %s2272_s12 = inlined_call_operand.hbm [shape: f32[16,128], index: 12, kind: output, shape index: {1}]  }
   0x1   :  { %19 = vsyncpa [#allocation6], 0 }
   0x2   :  { %20 = vsyncpa [#allocation9], 0 }
   0x3   :  { %21 = vsyncpa [#allocation12], 0 }
   0x4   :  { %22 = vsyncpa [#allocation4], 0  ;;  %s41_s23 = sshll.u32 %s2261_s1, 4  ;;  %s42_s23 = int_to_ptr.hbm [resolvable:$true] %s41_s23 }
   0x5   :  { %23 = vsyncpa [#allocation16], 0  ;;  %s2008_s24 = smov [#allocation5]   ;;  %s67_s28 = sshll.u32 %s2263_s3, 4  ;;  %s68_s28 = int_to_ptr.hbm [resolvable:$true] %s67_s28 }
   0x6   :  { %s43_s25 = sshll.u32 %s2008_s24, 4  ;;  %s2009_s29 = smov 128   ;;  %s44_s25 = int_to_ptr.vmem [resolvable:$true] %s43_s25 }
   0x7   :  { %s2010_s30 = smov 8   ;;  %s2011_s13 = smov [#allocation8]  }
   0x8   :  { %49 = dma.hbm_to_vmem [thread:$0]  %s42_s23, 256, %s44_s25, [#allocation6], %s2009_s29, %s2009_s29, %s2010_s30  }
   0x9   :  { %s69_s14 = sshll.u32 %s2011_s13, 4  ;;  %s2012_s1 = smov 192   ;;  %s70_s14 = int_to_ptr.vmem [resolvable:$true] %s69_s14 }
   0xa   :  { %s2013_s15 = smov 12   ;;  %s93_s3 = sshll.u32 %s2265_s5, 4  ;;  %s94_s3 = int_to_ptr.hbm [resolvable:$true] %s93_s3 }
   0xb   :  { %75 = dma.hbm_to_vmem [thread:$0]  %s68_s28, 3072, %s70_s14, [#allocation9], %s2012_s1, %s2012_s1, %s2013_s15  }
   0xc   :  { %s2014_s18 = smov [#allocation11]   ;;  %s28_s22 = sshll.u32 %s2260_s0, 4  ;;  %s29_s22 = int_to_ptr.hbm [resolvable:$true] %s28_s22 }
   0xd   :  { %s95_s19 = sshll.u32 %s2014_s18, 4  ;;  %s2015_s23 = smov [#allocation2]   ;;  %s96_s19 = int_to_ptr.vmem [resolvable:$true] %s95_s19 }
   0xe   :  { %101 = dma.hbm_to_vmem [thread:$0]  %s94_s3, 3072, %s96_s19, [#allocation12], %s2012_s1, %s2012_s1, %s2013_s15  }
   0xf   :  { %s30_s24 = sshll.u32 %s2015_s23, 4  ;;  %s2016_s25 = smov 64   ;;  %s31_s24 = int_to_ptr.vmem [resolvable:$true] %s30_s24 }
  0x10   :  { %s2017_s26 = smov 4   ;;  %s54_s28 = sshll.u32 %s2262_s2, 4  ;;  %s55_s28 = int_to_ptr.hbm [resolvable:$true] %s54_s28 }
  0x11   :  { %36 = dma.hbm_to_vmem [thread:$0]  %s29_s22, 128, %s31_s24, [#allocation3], %s2016_s25, %s2016_s25, %s2017_s26  }
  0x12   :  { %s2018_s13 = smov [#allocation7]   ;;  %s80_s17 = sshll.u32 %s2264_s4, 4  ;;  %s81_s17 = int_to_ptr.hbm [resolvable:$true] %s80_s17 }
  0x13   :  { %s56_s14 = sshll.u32 %s2018_s13, 4  ;;  %s2019_s3 = smov [#allocation10]   ;;  %s57_s14 = int_to_ptr.vmem [resolvable:$true] %s56_s14 }
  0x14   :  { %62 = dma.hbm_to_vmem [thread:$0]  %s55_s28, 256, %s57_s14, [#allocation6], %s2009_s29, %s2009_s29, %s2010_s30  }
  0x15   :  { %s82_s18 = sshll.u32 %s2019_s3, 4  ;;  %s106_s21 = sshll.u32 %s2266_s6, 4  ;;  %s83_s18 = int_to_ptr.vmem [resolvable:$true] %s82_s18  ;;  %s107_s21 = int_to_ptr.hbm [resolvable:$true] %s106_s21 }
  0x16   :  { %88 = dma.hbm_to_vmem [thread:$0]  %s81_s17, 3072, %s83_s18, [#allocation9], %s2012_s1, %s2012_s1, %s2013_s15  }
  0x17   :  { %s2020_s2 = smov [#allocation13]  }
  0x18   :  { %s108_s22 = sshll.u32 %s2020_s2, 4  ;;  %s109_s22 = int_to_ptr.vmem [resolvable:$true] %s108_s22 }
  0x19   :  { %114 = dma.hbm_to_vmem [thread:$0]  %s107_s21, 3072, %s109_s22, [#allocation12], %s2012_s1, %s2012_s1, %s2013_s15  }
  0x1a   :  { %1996 = dma.done.wait [#allocation3], 128  }
  0x1b   :  { %1997 = vsyncadd [#allocation3], 4294967168 }
  0x1c   :  { %1998 = dma.done.wait [#allocation6], 512  }
  0x1d   :  { %1999 = vsyncadd [#allocation6], 4294966784 }
  0x1e   :  { %2000 = dma.done.wait [#allocation9], 6144  }
  0x1f   :  { %2001 = vsyncadd [#allocation9], 4294961152 }
  0x20   :  { %2002 = dma.done.wait [#allocation12], 6144  }
  0x21   :  { %2003 = vsyncadd [#allocation12], 4294961152  ;;  %v1320_v0 = vld [vmem:[#allocation8 + $0xa8] sm:$0xf]  ;;  %v1649_v1 = vld [vmem:[#allocation8 + $0xb0] sm:$0xf0] }
  0x22   :  { %v1416_v2 = vld [vmem:[#allocation11 + $0xa8] sm:$0xf]  ;;  %v1321_v3 = vor.u32 %v1649_v1, %v1320_v0  ;;  %v1673_v4 = vld [vmem:[#allocation11 + $0xb0] sm:$0xf0]  ;;  %v1308_v5 = vld [vmem:[#allocation8 + $0x90] sm:$0xf] }
  0x23   :  { %v1646_v6 = vld [vmem:[#allocation8 + $0x98] sm:$0xf0]  ;;  %v1417_v7 = vor.u32 %v1673_v4, %v1416_v2  ;;  %v1404_v8 = vld [vmem:[#allocation11 + $0x90] sm:$0xf]  ;;  %v1648_v10 = vld [vmem:[#allocation8 + $0xac] sm:$0xf] }
  0x24   :  { %v1670_v9 = vld [vmem:[#allocation11 + $0x98] sm:$0xf0]  ;;  %329 = vmatpush.bf16.msra.mxu0 %v1321_v3  ;;  %v1309_v11 = vor.u32 %v1646_v6, %v1308_v5  ;;  %v1322_v12 = vld [vmem:[#allocation8 + $0xb4] sm:$0xf0]  ;;  %v1643_v16 = vld [vmem:[#allocation8 + $0x80] sm:$0xf0] }
  0x25   :  { %532 = vmatpush.bf16.msra.mxu3 %v1417_v7  ;;  %v1405_v13 = vor.u32 %v1670_v9, %v1404_v8  ;;  %v1325_v14 = vor.u32 %v1648_v10, %v1322_v12  ;;  %v1296_v15 = vld [vmem:[#allocation8 + $0x78] sm:$0xf]  ;;  %v1645_v17 = vld [vmem:[#allocation8 + $0x94] sm:$0xf]  ;;  %v1667_v19 = vld [vmem:[#allocation11 + $0x80] sm:$0xf0] }
  0x26   :  { %v1392_v18 = vld [vmem:[#allocation11 + $0x78] sm:$0xf]  ;;  %v1310_v20 = vld [vmem:[#allocation8 + $0x9c] sm:$0xf0]  ;;  %v1297_v22 = vor.u32 %v1643_v16, %v1296_v15  ;;  %v1642_v23 = vld [vmem:[#allocation8 + $0x7c] sm:$0xf] }
  0x27   :  { %343 = vmatpush.bf16.msra.mxu1 %v1325_v14  ;;  %v1313_v21 = vor.u32 %v1645_v17, %v1310_v20  ;;  %v1298_v24 = vld [vmem:[#allocation8 + $0x84] sm:$0xf0]  ;;  %v1393_v25 = vor.u32 %v1667_v19, %v1392_v18  ;;  %v1284_v26 = vld [vmem:[#allocation8 + $0x60] sm:$0xf]  ;;  %v1640_v27 = vld [vmem:[#allocation8 + $0x68] sm:$0xf0] }
  0x28   :  { %330 = vmatpush.bf16.msra.mxu0 %v1309_v11  ;;  %v1380_v28 = vld [vmem:[#allocation11 + $0x60] sm:$0xf]  ;;  %v1664_v29 = vld [vmem:[#allocation11 + $0x68] sm:$0xf0]  ;;  %v1301_v30 = vor.u32 %v1642_v23, %v1298_v24  ;;  %v1285_v31 = vor.u32 %v1640_v27, %v1284_v26  ;;  %v1639_v32 = vld [vmem:[#allocation8 + $0x64] sm:$0xf] }
  0x29   :  { %533 = vmatpush.bf16.msra.mxu3 %v1405_v13  ;;  %v1286_v33 = vld [vmem:[#allocation8 + $0x6c] sm:$0xf0]  ;;  %v1381_v34 = vor.u32 %v1664_v29, %v1380_v28  ;;  %v1272_v35 = vld [vmem:[#allocation8 + $0x48] sm:$0xf]  ;;  %v1637_v36 = vld [vmem:[#allocation8 + $0x50] sm:$0xf0] }
  0x2a   :  { %v1368_v37 = vld [vmem:[#allocation11 + $0x48] sm:$0xf]  ;;  %v1661_v38 = vld [vmem:[#allocation11 + $0x50] sm:$0xf0]  ;;  %v1289_v39 = vor.u32 %v1639_v32, %v1286_v33  ;;  %v1273_v40 = vor.u32 %v1637_v36, %v1272_v35  ;;  %v1260_v41 = vld [vmem:[#allocation8 + $0x30] sm:$0xf] }
  0x2b   :  { %344 = vmatpush.bf16.msra.mxu1 %v1313_v21  ;;  %v1636_v42 = vld [vmem:[#allocation8 + $0x4c] sm:$0xf]  ;;  %v1274_v43 = vld [vmem:[#allocation8 + $0x54] sm:$0xf0]  ;;  %v1369_v44 = vor.u32 %v1661_v38, %v1368_v37  ;;  %v1634_v45 = vld [vmem:[#allocation8 + $0x38] sm:$0xf0] }
  0x2c   :  { %331 = vmatpush.bf16.msra.mxu0 %v1297_v22  ;;  %v1328_v46 = vld [vmem:[#allocation8 + $0xb0] sm:$0xf]  ;;  %v1650_v47 = vld [vmem:[#allocation8 + $0xb8] sm:$0xf0]  ;;  %v1277_v51 = vor.u32 %v1636_v42, %v1274_v43  ;;  %v1316_v52 = vld [vmem:[#allocation8 + $0x98] sm:$0xf]  ;;  %v1261_v53 = vor.u32 %v1634_v45, %v1260_v41 }
  0x2d   :  { %534 = vmatpush.bf16.msra.mxu3 %v1393_v25  ;;  %v1356_v48 = vld [vmem:[#allocation11 + $0x30] sm:$0xf]  ;;  %v1658_v49 = vld [vmem:[#allocation11 + $0x38] sm:$0xf0]  ;;  %v1329_v50 = vor.u32 %v1650_v47, %v1328_v46  ;;  %v1633_v54 = vld [vmem:[#allocation8 + $0x34] sm:$0xf] }
  0x2e   :  { %v1262_v55 = vld [vmem:[#allocation8 + $0x3c] sm:$0xf0]  ;;  %v1647_v56 = vld [vmem:[#allocation8 + $0xa0] sm:$0xf0]  ;;  %v1357_v57 = vor.u32 %v1658_v49, %v1356_v48  ;;  %v1248_v58 = vld [vmem:[#allocation8 + $0x18] sm:$0xf] }
  0x2f   :  { %345 = vmatpush.bf16.msra.mxu1 %v1301_v30  ;;  %357 = vmatpush.bf16.msra.mxu2 %v1329_v50  ;;  %v1631_v59 = vld [vmem:[#allocation8 + $0x20] sm:$0xf0]  ;;  %v1344_v60 = vld [vmem:[#allocation11 + $0x18] sm:$0xf]  ;;  %v1317_v61 = vor.u32 %v1647_v56, %v1316_v52  ;;  %v1304_v63 = vld [vmem:[#allocation8 + $0x80] sm:$0xf]  ;;  %v1265_v1 = vor.u32 %v1633_v54, %v1262_v55 }
  0x30   :  { %332 = vmatpush.bf16.msra.mxu0 %v1285_v31  ;;  %v1655_v62 = vld [vmem:[#allocation11 + $0x20] sm:$0xf0]  ;;  %v1644_v0 = vld [vmem:[#allocation8 + $0x88] sm:$0xf0]  ;;  %v1236_v2 = vld [vmem:[#allocation8] sm:$0xf]  ;;  %v1249_v3 = vor.u32 %v1631_v59, %v1248_v58 }
  0x31   :  { %535 = vmatpush.bf16.msra.mxu3 %v1381_v34  ;;  %v1628_v4 = vld [vmem:[#allocation8 + $0x8] sm:$0xf0]  ;;  %v1630_v5 = vld [vmem:[#allocation8 + $0x1c] sm:$0xf]  ;;  %v1250_v6 = vld [vmem:[#allocation8 + $0x24] sm:$0xf0]  ;;  %v1305_v7 = vor.u32 %v1644_v0, %v1304_v63  ;;  %v1345_v8 = vor.u32 %v1655_v62, %v1344_v60 }
  0x32   :  { %v1332_v9 = vld [vmem:[#allocation11] sm:$0xf]  ;;  %v1292_v10 = vld [vmem:[#allocation8 + $0x68] sm:$0xf]  ;;  %v1641_v11 = vld [vmem:[#allocation8 + $0x70] sm:$0xf0]  ;;  %v1253_v15 = vor.u32 %v1630_v5, %v1250_v6  ;;  %v1237_v17 = vor.u32 %v1628_v4, %v1236_v2 }
  0x33   :  { %346 = vmatpush.bf16.msra.mxu1 %v1289_v39  ;;  %358 = vmatpush.bf16.msra.mxu2 %v1317_v61  ;;  %v1652_v12 = vld [vmem:[#allocation11 + $0x8] sm:$0xf0]  ;;  %v1418_v14 = vld [vmem:[#allocation11 + $0xb4] sm:$0xf0]  ;;  %v2127_v16 = vld [vmem:[#allocation5] sm:$0xff]  ;;  %v1293_v21 = vor.u32 %v1641_v11, %v1292_v10  ;;  %s1196_s23 = sshll.u32 %s2271_s11, 4  ;;  %s1197_s23 = int_to_ptr.hbm [resolvable:$true] %s1196_s23 }
  0x34   :  { %333 = vmatpush.bf16.msra.mxu0 %v1273_v40  ;;  %v1672_v13 = vld [vmem:[#allocation11 + $0xac] sm:$0xf]  ;;  %v1627_v19 = vld [vmem:[#allocation8 + $0x4] sm:$0xf]  ;;  %v1238_v20 = vld [vmem:[#allocation8 + $0xc] sm:$0xf0]  ;;  %v1333_v22 = vor.u32 %v1652_v12, %v1332_v9 }
  0x35   :  { %536 = vmatpush.bf16.msra.mxu3 %v1369_v44  ;;  %v2129_v18 = vld [vmem:[#allocation5 + $0x8] sm:$0xff]  ;;  %v1421_v23 = vor.u32 %v1672_v13, %v1418_v14  ;;  %v1669_v24 = vld [vmem:[#allocation11 + $0x94] sm:$0xf]  ;;  %v1424_v25 = vld [vmem:[#allocation11 + $0xb0] sm:$0xf]  ;;  %v1241_v30 = vor.u32 %v1627_v19, %v1238_v20  ;;  %s2021_s24 = smov [#allocation14]  }
  0x36   :  { %v1674_v26 = vld [vmem:[#allocation11 + $0xb8] sm:$0xf0]  ;;  %v1406_v27 = vld [vmem:[#allocation11 + $0x9c] sm:$0xf0]  ;;  %v1280_v28 = vld [vmem:[#allocation8 + $0x50] sm:$0xf]  ;;  %v2135_v32 = vpack.c.bf16 %v2129_v18, %v2127_v16 }
  0x37   :  { %347 = vmatpush.bf16.msra.mxu1 %v1277_v51  ;;  %359 = vmatpush.bf16.msra.mxu2 %v1305_v7  ;;  %v1638_v29 = vld [vmem:[#allocation8 + $0x58] sm:$0xf0]  ;;  %v1425_v33 = vor.u32 %v1674_v26, %v1424_v25  ;;  %v1394_v35 = vld [vmem:[#allocation11 + $0x84] sm:$0xf0]  ;;  %v1409_v36 = vor.u32 %v1669_v24, %v1406_v27  ;;  %v1412_v37 = vld [vmem:[#allocation11 + $0x98] sm:$0xf] }
  0x38   :  { %334 = vmatpush.bf16.msra.mxu0 %v1261_v53  ;;  %v2131_v31 = vld [vmem:[#allocation2] sm:$0xff]  ;;  %v1671_v38 = vld [vmem:[#allocation11 + $0xa0] sm:$0xf0]  ;;  %v1281_v39 = vor.u32 %v1638_v29, %v1280_v28  ;;  %v1400_v45 = vld [vmem:[#allocation11 + $0x80] sm:$0xf]  ;;  %s1194_s25 = sshll.u32 %s2021_s24, 4  ;;  %s1195_s25 = int_to_ptr.vmem [resolvable:$true] %s1194_s25 }
  0x39   :  { %537 = vmatpush.bf16.msra.mxu3 %v1357_v57  ;;  %v1666_v34 = vld [vmem:[#allocation11 + $0x7c] sm:$0xf]  ;;  %v1268_v40 = vld [vmem:[#allocation8 + $0x38] sm:$0xf]  ;;  %v1635_v41 = vld [vmem:[#allocation8 + $0x40] sm:$0xf0]  ;;  %v1413_v42 = vor.u32 %v1671_v38, %v1412_v37 }
  0x3a   :  { %v1397_v43 = vor.u32 %v1666_v34, %v1394_v35  ;;  %v1663_v44 = vld [vmem:[#allocation11 + $0x64] sm:$0xf]  ;;  %v1668_v46 = vld [vmem:[#allocation11 + $0x88] sm:$0xf0]  ;;  %v1269_v47 = vor.u32 %v1635_v41, %v1268_v40  ;;  %v1382_v48 = vld [vmem:[#allocation11 + $0x6c] sm:$0xf0] }
  0x3b   :  { %348 = vmatpush.bf16.msra.mxu1 %v1265_v1  ;;  %360 = vmatpush.bf16.msra.mxu2 %v1293_v21  ;;  %v1256_v49 = vld [vmem:[#allocation8 + $0x20] sm:$0xf]  ;;  %v1632_v50 = vld [vmem:[#allocation8 + $0x28] sm:$0xf0]  ;;  %v1401_v51 = vor.u32 %v1668_v46, %v1400_v45  ;;  %v1385_v52 = vor.u32 %v1663_v44, %v1382_v48  ;;  %v1388_v54 = vld [vmem:[#allocation11 + $0x68] sm:$0xf] }
  0x3c   :  { %335 = vmatpush.bf16.msra.mxu0 %v1249_v3  ;;  %v1660_v53 = vld [vmem:[#allocation11 + $0x4c] sm:$0xf]  ;;  %v1665_v55 = vld [vmem:[#allocation11 + $0x70] sm:$0xf0]  ;;  %v1257_v56 = vor.u32 %v1632_v50, %v1256_v49  ;;  %v1370_v57 = vld [vmem:[#allocation11 + $0x54] sm:$0xf0] }
  0x3d   :  { %538 = vmatpush.bf16.msra.mxu3 %v1345_v8  ;;  %v1244_v58 = vld [vmem:[#allocation8 + $0x8] sm:$0xf]  ;;  %v1629_v59 = vld [vmem:[#allocation8 + $0x10] sm:$0xf0]  ;;  %v1389_v60 = vor.u32 %v1665_v55, %v1388_v54  ;;  %v1373_v61 = vor.u32 %v1660_v53, %v1370_v57  ;;  %v1376_v62 = vld [vmem:[#allocation11 + $0x50] sm:$0xf] }
  0x3e   :  { %v1662_v63 = vld [vmem:[#allocation11 + $0x58] sm:$0xf0]  ;;  %v1245_v0 = vor.u32 %v1629_v59, %v1244_v58  ;;  %v1657_v1 = vld [vmem:[#allocation11 + $0x34] sm:$0xf]  ;;  %v1358_v2 = vld [vmem:[#allocation11 + $0x3c] sm:$0xf0] }
  0x3f   :  { %349 = vmatpush.bf16.msra.mxu1 %v1253_v15  ;;  %361 = vmatpush.bf16.msra.mxu2 %v1281_v39  ;;  %v1377_v3 = vor.u32 %v1662_v63, %v1376_v62  ;;  %v1361_v4 = vor.u32 %v1657_v1, %v1358_v2  ;;  %v1364_v5 = vld [vmem:[#allocation11 + $0x38] sm:$0xf]  ;;  %v1659_v6 = vld [vmem:[#allocation11 + $0x40] sm:$0xf0]  ;;  %v1654_v7 = vld [vmem:[#allocation11 + $0x1c] sm:$0xf] }
  0x40   :  { %336 = vmatpush.bf16.msra.mxu0 %v1237_v17  ;;  %v1346_v8 = vld [vmem:[#allocation11 + $0x24] sm:$0xf0]  ;;  %v1365_v9 = vor.u32 %v1659_v6, %v1364_v5  ;;  %v1352_v11 = vld [vmem:[#allocation11 + $0x20] sm:$0xf]  ;;  %v1656_v12 = vld [vmem:[#allocation11 + $0x28] sm:$0xf0] }
  0x41   :  { %539 = vmatpush.bf16.msra.mxu3 %v1333_v22  ;;  %v1349_v10 = vor.u32 %v1654_v7, %v1346_v8  ;;  %v1651_v13 = vld [vmem:[#allocation11 + $0x4] sm:$0xf]  ;;  %v1334_v14 = vld [vmem:[#allocation11 + $0xc] sm:$0xf0]  ;;  %v1353_v15 = vor.u32 %v1656_v12, %v1352_v11  ;;  %v1340_v19 = vld [vmem:[#allocation11 + $0x8] sm:$0xf] }
  0x42   :  { %v1337_v17 = vor.u32 %v1651_v13, %v1334_v14  ;;  %v1653_v20 = vld [vmem:[#allocation11 + $0x10] sm:$0xf0]  ;;  %v1516_v22 = vld [vmem:[#allocation10 + $0xa8] sm:$0xf]  ;;  %v2146_v24 = vld [vmem:[%s2267_s7] sm:$0x7] }
  0x43   :  { %350 = vmatpush.bf16.msra.mxu1 %v1241_v30  ;;  %337 = vmatmul.bf16.vlgmr.msra.gmra.mxu0 %v2131_v31  ;;  %v1341_v21 = vor.u32 %v1653_v20, %v1340_v19  ;;  %v189_v26 = vperm.slane %v2146_v24, 0  ;;  %v1504_v28 = vld [vmem:[#allocation10 + $0x90] sm:$0xf]  ;;  %v1694_v29 = vld [vmem:[#allocation10 + $0x98] sm:$0xf0]  ;;  %s1209_s14 = sshll.u32 %s2272_s12, 4  ;;  %s1210_s14 = int_to_ptr.hbm [resolvable:$true] %s1209_s14 }
  0x44   :  { %546 = vmatpush.bf16.msrb.mxu0 %v1421_v23  ;;  %540 = vmatmul.bf16.vlgmr.msra.gmra.mxu3 %v2135_v32  ;;  %v1697_v23 = vld [vmem:[#allocation10 + $0xb0] sm:$0xf0]  ;;  %v1505_v30 = vor.u32 %v1694_v29, %v1504_v28  ;;  %v1518_v34 = vld [vmem:[#allocation10 + $0xb4] sm:$0xf0]  ;;  %v1506_v41 = vld [vmem:[#allocation10 + $0x9c] sm:$0xf0] }
  0x45   :  { %362 = vmatpush.bf16.msra.mxu2 %v1269_v47  ;;  %v1517_v25 = vor.u32 %v1697_v23, %v1516_v22  ;;  %v1492_v35 = vld [vmem:[#allocation10 + $0x78] sm:$0xf]  ;;  %v1693_v40 = vld [vmem:[#allocation10 + $0x94] sm:$0xf]  ;;  %v1480_v44 = vld [vmem:[#allocation10 + $0x60] sm:$0xf] }
  0x46   :  { %351 = vmatmul.bf16.vlgmr.msra.gmra.mxu1 %v2131_v31  ;;  %v1688_v45 = vld [vmem:[#allocation10 + $0x68] sm:$0xf0]  ;;  %v1524_v48 = vld [vmem:[#allocation10 + $0xb0] sm:$0xf]  ;;  %v1698_v49 = vld [vmem:[#allocation10 + $0xb8] sm:$0xf0] }
  0x47   :  { %560 = vmatpush.bf16.msrb.mxu1 %v1425_v33  ;;  %v1696_v33 = vld [vmem:[#allocation10 + $0xac] sm:$0xf]  ;;  %v1481_v47 = vor.u32 %v1688_v45, %v1480_v44  ;;  %v1525_v50 = vor.u32 %v1698_v49, %v1524_v48  ;;  %v1690_v55 = vld [vmem:[#allocation10 + $0x7c] sm:$0xf]  ;;  %v1468_v58 = vld [vmem:[#allocation10 + $0x48] sm:$0xf] }
  0x48   :  { %547 = vmatpush.bf16.msrb.mxu0 %v1409_v36  ;;  %v1691_v36 = vld [vmem:[#allocation10 + $0x80] sm:$0xf0]  ;;  %v1685_v59 = vld [vmem:[#allocation10 + $0x50] sm:$0xf0]  ;;  %v1512_v62 = vld [vmem:[#allocation10 + $0x98] sm:$0xf] }
  0x49   :  { %363 = vmatpush.bf16.msra.mxu2 %v1257_v56  ;;  %v1493_v37 = vor.u32 %v1691_v36, %v1492_v35  ;;  %v1494_v56 = vld [vmem:[#allocation10 + $0x84] sm:$0xf0]  ;;  %v1695_v63 = vld [vmem:[#allocation10 + $0xa0] sm:$0xf0]  ;;  %v1600_v2 = vld [vmem:[#allocation13 + $0x90] sm:$0xf] }
  0x4a   :  { %v1497_v57 = vor.u32 %v1690_v55, %v1494_v56  ;;  %v1513_v1 = vor.u32 %v1695_v63, %v1512_v62  ;;  %v1687_v6 = vld [vmem:[#allocation10 + $0x64] sm:$0xf]  ;;  %v1482_v7 = vld [vmem:[#allocation10 + $0x6c] sm:$0xf0]  ;;  %v1500_v14 = vld [vmem:[#allocation10 + $0x80] sm:$0xf] }
  0x4b   :  { %561 = vmatpush.bf16.msrb.mxu1 %v1413_v42  ;;  %v1485_v8 = vor.u32 %v1687_v6, %v1482_v7  ;;  %v1588_v20 = vld [vmem:[#allocation13 + $0x78] sm:$0xf]  ;;  %v1684_v23 = vld [vmem:[#allocation10 + $0x4c] sm:$0xf]  ;;  %v1679_v29 = vld [vmem:[#allocation10 + $0x20] sm:$0xf0] }
  0x4c   :  { %548 = vmatpush.bf16.msrb.mxu0 %v1397_v43  ;;  %v1509_v43 = vor.u32 %v1693_v40, %v1506_v41  ;;  %v1712_v35 = vld [vmem:[#allocation13 + $0x68] sm:$0xf0]  ;;  %v1432_v41 = vld [vmem:[#allocation10] sm:$0xf]  ;;  %v191_v6 = vperm.slane %v2146_v24, 2 }
  0x4d   :  { %364 = vmatpush.bf16.msra.mxu2 %v1245_v0  ;;  %v1720_v48 = vld [vmem:[#allocation13 + $0xac] sm:$0xf] }
  0x4f   :  { %562 = vmatpush.bf16.msrb.mxu1 %v1401_v51  ;;  %v1612_v51 = vld [vmem:[#allocation13 + $0xa8] sm:$0xf] }
  0x50   :  { %549 = vmatpush.bf16.msrb.mxu0 %v1385_v52  ;;  %365 = vmatmul.bf16.vlgmr.msra.gmra.mxu2 %v2131_v31  ;;  %v1721_v52 = vld [vmem:[#allocation13 + $0xb0] sm:$0xf0] }
  0x51   :  { %845 = vmatpush.bf16.msrb.mxu2 %v1517_v25  ;;  %v1613_v54 = vor.u32 %v1721_v52, %v1612_v51  ;;  %v1470_v25 = vld [vmem:[#allocation10 + $0x54] sm:$0xf0] }
  0x52   :  { %v1473_v28 = vor.u32 %v1684_v23, %v1470_v25 }
  0x53   :  { %563 = vmatpush.bf16.msrb.mxu1 %v1389_v60 }
  0x54   :  { %550 = vmatpush.bf16.msrb.mxu0 %v1373_v61  ;;  %v1469_v61 = vor.u32 %v1685_v59, %v1468_v58  ;;  %v1678_v58 = vld [vmem:[#allocation10 + $0x1c] sm:$0xf]  ;;  %v1446_v59 = vld [vmem:[#allocation10 + $0x24] sm:$0xf0] }
  0x55   :  { %846 = vmatpush.bf16.msrb.mxu2 %v1505_v30  ;;  %v1488_v30 = vld [vmem:[#allocation10 + $0x68] sm:$0xf] }
  0x57   :  { %564 = vmatpush.bf16.msrb.mxu1 %v1377_v3  ;;  %v1718_v3 = vld [vmem:[#allocation13 + $0x98] sm:$0xf0] }
  0x58   :  { %551 = vmatpush.bf16.msrb.mxu0 %v1361_v4  ;;  %v1601_v5 = vor.u32 %v1718_v3, %v1600_v2  ;;  %v1464_v2 = vld [vmem:[#allocation10 + $0x38] sm:$0xf]  ;;  %v1683_v3 = vld [vmem:[#allocation10 + $0x40] sm:$0xf0] }
  0x59   :  { %847 = vmatpush.bf16.msrb.mxu2 %v1493_v37  ;;  %v1465_v7 = vor.u32 %v1683_v3, %v1464_v2 }
  0x5b   :  { %565 = vmatpush.bf16.msrb.mxu1 %v1365_v9  ;;  %v1456_v9 = vld [vmem:[#allocation10 + $0x30] sm:$0xf] }
  0x5c   :  { %552 = vmatpush.bf16.msrb.mxu0 %v1349_v10  ;;  %v1682_v10 = vld [vmem:[#allocation10 + $0x38] sm:$0xf0] }
  0x5d   :  { %848 = vmatpush.bf16.msrb.mxu2 %v1481_v47  ;;  %v1457_v13 = vor.u32 %v1682_v10, %v1456_v9  ;;  %v1686_v47 = vld [vmem:[#allocation10 + $0x58] sm:$0xf0]  ;;  %v1602_v9 = vld [vmem:[#allocation13 + $0x9c] sm:$0xf0] }
  0x5f   :  { %566 = vmatpush.bf16.msrb.mxu1 %v1353_v15  ;;  %v1692_v15 = vld [vmem:[#allocation10 + $0x88] sm:$0xf0] }
  0x60   :  { %553 = vmatpush.bf16.msrb.mxu0 %v1337_v17  ;;  %v1501_v19 = vor.u32 %v1692_v15, %v1500_v14  ;;  %v1552_v14 = vld [vmem:[#allocation13 + $0x30] sm:$0xf]  ;;  %v1706_v15 = vld [vmem:[#allocation13 + $0x38] sm:$0xf0] }
  0x61   :  { %849 = vmatpush.bf16.msrb.mxu2 %v1469_v61 }
  0x63   :  { %554 = vmatmul.bf16.vlgmr.msrb.gmra.mxu0 %v2135_v32  ;;  %567 = vmatpush.bf16.msrb.mxu1 %v1341_v21  ;;  %v1715_v21 = vld [vmem:[#allocation13 + $0x80] sm:$0xf0] }
  0x64   :  { %873 = vmatpush.bf16.msra.mxu0 %v1525_v50  ;;  %v1589_v22 = vor.u32 %v1715_v21, %v1588_v20  ;;  %v1675_v20 = vld [vmem:[#allocation10 + $0x4] sm:$0xf]  ;;  %v1434_v21 = vld [vmem:[#allocation10 + $0xc] sm:$0xf0] }
  0x65   :  { %850 = vmatpush.bf16.msrb.mxu2 %v1457_v13 }
  0x66   :  { %568 = vmatmul.bf16.vlgmr.msrb.gmra.mxu1 %v2135_v32  ;;  %v1521_v32 = vor.u32 %v1696_v33, %v1518_v34 }
  0x67   :  { %1048 = vmatpush.bf16.msra.mxu1 %v1613_v54  ;;  %v1564_v54 = vld [vmem:[#allocation13 + $0x48] sm:$0xf] }
  0x68   :  { %859 = vmatpush.bf16.msrb.mxu3 %v1521_v32  ;;  %874 = vmatpush.bf16.msra.mxu0 %v1513_v1  ;;  %v1576_v32 = vld [vmem:[#allocation13 + $0x60] sm:$0xf]  ;;  %v1449_v1 = vor.u32 %v1678_v58, %v1446_v59  ;;  %v1700_v58 = vld [vmem:[#allocation13 + $0x8] sm:$0xf0] }
  0x69   :  { %v1577_v37 = vor.u32 %v1712_v35, %v1576_v32  ;;  %v1714_v32 = vld [vmem:[#allocation13 + $0x7c] sm:$0xf]  ;;  %v1590_v35 = vld [vmem:[#allocation13 + $0x84] sm:$0xf0] }
  0x6b   :  { %1049 = vmatpush.bf16.msra.mxu1 %v1601_v5  ;;  %v2171_v5 = vld [vmem:[%s2269_s9] ss:$0 sm:$0xff] }
  0x6c   :  { %860 = vmatpush.bf16.msrb.mxu3 %v1509_v43  ;;  %875 = vmatpush.bf16.msra.mxu0 %v1501_v19  ;;  %v1553_v19 = vor.u32 %v1706_v15, %v1552_v14  ;;  %v1708_v15 = vld [vmem:[#allocation13 + $0x4c] sm:$0xf] }
  0x6f   :  { %1050 = vmatpush.bf16.msra.mxu1 %v1589_v22  ;;  %v1620_v22 = vld [vmem:[#allocation13 + $0xb0] sm:$0xf] }
  0x70   :  { %861 = vmatpush.bf16.msrb.mxu3 %v1497_v57  ;;  %v1709_v57 = vld [vmem:[#allocation13 + $0x50] sm:$0xf0] }
  0x73   :  { %1051 = vmatpush.bf16.msra.mxu1 %v1577_v37  ;;  %v1540_v37 = vld [vmem:[#allocation13 + $0x18] sm:$0xf] }
  0x74   :  { %862 = vmatpush.bf16.msrb.mxu3 %v1485_v8  ;;  %v1717_v8 = vld [vmem:[#allocation13 + $0x94] sm:$0xf] }
  0x75   :  { %v1605_v13 = vor.u32 %v1717_v8, %v1602_v9  ;;  %v2206_v9 = vld [vmem:[#allocation7] sm:$0xff] }
  0x78   :  { %863 = vmatpush.bf16.msrb.mxu3 %v1473_v28  ;;  %v1452_v28 = vld [vmem:[#allocation10 + $0x20] sm:$0xf] }
  0xc0   :  { %v338_v27 = vpop.f32.mrf.mxu0 }
  0xc1   :  { %v339_v31 = vadd.f32 %v338_v27, %v189_v26  ;;  %v1444_v27 = vld [vmem:[#allocation10 + $0x18] sm:$0xf] }
  0xc2   :  { %v1445_v33 = vor.u32 %v1679_v29, %v1444_v27  ;;  %v1722_v27 = vld [vmem:[#allocation13 + $0xb8] sm:$0xf0]  ;;  %v1680_v29 = vld [vmem:[#allocation10 + $0x28] sm:$0xf0] }
  0xc3   :  { %v352_v60 = vpop.f32.mrf.mxu1 }
  0xc4   :  { %851 = vmatpush.bf16.msrb.mxu2 %v1445_v33  ;;  %v1621_v33 = vor.u32 %v1722_v27, %v1620_v22  ;;  %v1584_v22 = vld [vmem:[#allocation13 + $0x68] sm:$0xf]  ;;  %v1705_v27 = vld [vmem:[#allocation13 + $0x34] sm:$0xf] }
  0xc7   :  { %v541_v38 = vpop.f32.mrf.mxu3 }
  0xc8   :  { %v574_v39 = vadd.f32 %v541_v38, %v339_v31  ;;  %v340_v42 = vpop.f32.mrf.mxu0  ;;  %v1689_v31 = vld [vmem:[#allocation10 + $0x70] sm:$0xf0] }
  0xc9   :  { %v341_v53 = vadd.f32 %v340_v42, %v189_v26  ;;  %v190_v26 = vperm.slane %v2146_v24, 1  ;;  %v1489_v34 = vor.u32 %v1689_v31, %v1488_v30  ;;  %v1681_v38 = vld [vmem:[#allocation10 + $0x34] sm:$0xf]  ;;  %v1676_v42 = vld [vmem:[#allocation10 + $0x8] sm:$0xf0] }
  0xca   :  { %v1426_v46 = vmul.f32 -1.442695, %v574_v39  ;;  %v1458_v39 = vld [vmem:[#allocation10 + $0x3c] sm:$0xf0]  ;;  %v1433_v45 = vor.u32 %v1676_v42, %v1432_v41  ;;  %v1703_v41 = vld [vmem:[#allocation13 + $0x20] sm:$0xf0] }
  0xcb   :  { %v2153_v36 = vpop.f32.mrf.mxu1  ;;  %876 = vmatpush.bf16.msra.mxu0 %v1489_v34  ;;  %v1461_v40 = vor.u32 %v1681_v38, %v1458_v39  ;;  %v353_v44 = vadd.f32 %v352_v60, %v190_v26  ;;  %v1453_v34 = vor.u32 %v1680_v29, %v1452_v28  ;;  %v1608_v42 = vld [vmem:[#allocation13 + $0x98] sm:$0xf]  ;;  %v1554_v28 = vld [vmem:[#allocation13 + $0x3c] sm:$0xf0] }
  0xcc   :  { %1740 = vpow2.f32 %v1426_v46  ;;  %v1476_v46 = vld [vmem:[#allocation10 + $0x50] sm:$0xf]  ;;  %852 = vmatpush.bf16.msrb.mxu2 %v1433_v45  ;;  %v355_v31 = vadd.f32 %v2153_v36, %v190_v26 }
  0xcd   :  { %v1477_v52 = vor.u32 %v1686_v47, %v1476_v46  ;;  %864 = vmatpush.bf16.msrb.mxu3 %v1461_v40  ;;  %v1593_v40 = vor.u32 %v1714_v32, %v1590_v35  ;;  %v1440_v46 = vld [vmem:[#allocation10 + $0x8] sm:$0xf]  ;;  %v1677_v47 = vld [vmem:[#allocation10 + $0x10] sm:$0xf0] }
  0xcf   :  { %v543_v0 = vpop.f32.mrf.mxu3  ;;  %877 = vmatpush.bf16.msra.mxu0 %v1477_v52 }
  0xd0   :  { %v575_v4 = vadd.f32 %v543_v0, %v341_v53  ;;  %v1614_v53 = vld [vmem:[#allocation13 + $0xb4] sm:$0xf0]  ;;  %v1565_v0 = vor.u32 %v1709_v57, %v1564_v54  ;;  %v1711_v54 = vld [vmem:[#allocation13 + $0x64] sm:$0xf]  ;;  %v1528_v57 = vld [vmem:[#allocation13] sm:$0xf] }
  0xd1   :  { %v1617_v56 = vor.u32 %v1720_v48, %v1614_v53  ;;  %865 = vmatpush.bf16.msrb.mxu3 %v1449_v1  ;;  %v1441_v53 = vor.u32 %v1677_v47, %v1440_v46  ;;  %v1699_v46 = vld [vmem:[#allocation13 + $0x4] sm:$0xf]  ;;  %v1530_v47 = vld [vmem:[#allocation13 + $0xc] sm:$0xf0] }
  0xd2   :  { %v1741_v11 = vpop.eup %1740  ;;  %v1427_v12 = vmul.f32 -1.442695, %v575_v4  ;;  %1052 = vmatpush.bf16.msra.mxu1 %v1565_v0  ;;  %v1533_v24 = vor.u32 %v1699_v46, %v1530_v47 }
  0xd3   :  { %v2149_v17 = vadd.f32 1.0, %v1741_v11  ;;  %1062 = vmatpush.bf16.msra.mxu2 %v1617_v56  ;;  %878 = vmatpush.bf16.msra.mxu0 %v1465_v7  ;;  %v1716_v7 = vld [vmem:[#allocation13 + $0x88] sm:$0xf0] }
  0xd4   :  { %1742 = vpow2.f32 %v1427_v12 }
  0xd5   :  { %1744 = vrcp.f32 %v2149_v17  ;;  %v595_v51 = vand.u32 2147483648, %v2149_v17  ;;  %vm589_vm0 = vweird.f32 %v2149_v17  ;;  %v593_v61 = vand.u32 2147483647, %v2149_v17 }
  0xd6   :  { %1053 = vmatpush.bf16.msra.mxu1 %v1553_v19 }
  0xd7   :  { %v596_v4 = vor.u32 1.1754944e-38, %v595_v51  ;;  %1063 = vmatpush.bf16.msra.mxu2 %v1605_v13  ;;  %vm594_vm3 = vcmp.eq.f32.partialorder %v593_v61, 8.507059e+37  ;;  %879 = vmatpush.bf16.msra.mxu0 %v1453_v34  ;;  %v1710_v34 = vld [vmem:[#allocation13 + $0x58] sm:$0xf0] }
  0xda   :  { %v1743_v43 = vpop.eup %1742 }
  0xdb   :  { %v2157_v49 = vpop.eup %1744  ;;  %v2159_v50 = vadd.f32 1.0, %v1743_v43  ;;  %v1719_v43 = vld [vmem:[#allocation13 + $0xa0] sm:$0xf0]  ;;  %1064 = vmatpush.bf16.msra.mxu2 %v1593_v40  ;;  %880 = vmatpush.bf16.msra.mxu0 %v1441_v53 }
  0xdc   :  { %v585_v55 = vmul.f32 %v2157_v49, %v2149_v17  ;;  %vm590_vm1 = vweird.f32 %v2157_v49  ;;  %v1437_v17 = vor.u32 %v1675_v20, %v1434_v21  ;;  %v1609_v45 = vor.u32 %v1719_v43, %v1608_v42 }
  0xdd   :  { %1746 = vrcp.f32 %v2159_v50  ;;  %vm2179_vm2 = vmor %vm589_vm0, %vm590_vm1  ;;  %v610_v3 = vand.u32 2147483648, %v2159_v50  ;;  %vm604_vm5 = vweird.f32 %v2159_v50  ;;  %v608_v8 = vand.u32 2147483647, %v2159_v50 }
  0xde   :  { %v586_v63 = vsub.f32 1.0, %v585_v55  ;;  %866 = vmatpush.bf16.msrb.mxu3 %v1437_v17  ;;  %v1578_v55 = vld [vmem:[#allocation13 + $0x6c] sm:$0xf0] }
  0xdf   :  { %v1581_v56 = vor.u32 %v1711_v54, %v1578_v55  ;;  %vm609_vm7 = vcmp.eq.f32.partialorder %v608_v8, 8.507059e+37 }
  0xe0   :  { %v555_v60 = vpop.f32.mrf.mxu0  ;;  %v587_v11 = vmul.f32 %v2157_v49, %v586_v63 }
  0xe1   :  { %v614_v62 = vadd.f32 %v555_v60, %v353_v44  ;;  %v1541_v44 = vor.u32 %v1703_v41, %v1540_v37  ;;  %1065 = vmatpush.bf16.msra.mxu2 %v1581_v56  ;;  %v1542_v37 = vld [vmem:[#allocation13 + $0x24] sm:$0xf0] }
  0xe2   :  { %v588_v25 = vadd.f32 %v2157_v49, %v587_v11  ;;  %1076 = vmatpush.bf16.msra.mxu3 %v1621_v33  ;;  %v1572_v33 = vld [vmem:[#allocation13 + $0x50] sm:$0xf] }
  0xe3   :  { %v1428_v10 = vmul.f32 -1.442695, %v614_v62  ;;  %v569_v23 = vpop.f32.mrf.mxu1  ;;  %v2184_v30 = vpop.eup %1746  ;;  %1054 = vmatpush.bf16.msra.mxu1 %v1541_v44  ;;  %v1529_v62 = vor.u32 %v1700_v58, %v1528_v57  ;;  %v1573_v41 = vor.u32 %v1710_v34, %v1572_v33  ;;  %v1707_v44 = vld [vmem:[#allocation13 + $0x40] sm:$0xf0]  ;;  %v1548_v58 = vld [vmem:[#allocation13 + $0x20] sm:$0xf] }
  0xe4   :  { %v592_v38 = vsel %vm2179_vm2, %v2157_v49, %v588_v25  ;;  %v600_v39 = vmul.f32 %v2184_v30, %v2159_v50  ;;  %v658_v26 = vadd.f32 %v2171_v5, %v569_v23  ;;  %v366_v49 = vpop.f32.mrf.mxu2  ;;  %vm605_vm4 = vweird.f32 %v2184_v30  ;;  %v1566_v50 = vld [vmem:[#allocation13 + $0x54] sm:$0xf0]  ;;  %v1713_v23 = vld [vmem:[#allocation13 + $0x70] sm:$0xf0] }
  0xe5   :  { %1748 = vpow2.f32 %v1428_v10  ;;  %v597_v48 = vsel %vm594_vm3, %v596_v4, %v592_v38  ;;  %v367_v1 = vadd.f32 %v366_v49, %v191_v6  ;;  %v1596_v4 = vld [vmem:[#allocation13 + $0x80] sm:$0xf]  ;;  %v2208_v10 = vld [vmem:[#allocation7 + $0x8] sm:$0xff]  ;;  %vm2212_vm6 = vmor %vm604_vm5, %vm605_vm4  ;;  %v1569_v21 = vor.u32 %v1708_v15, %v1566_v50 }
  0xe6   :  { %v601_v52 = vsub.f32 1.0, %v600_v39  ;;  %v660_v0 = vmul.f32 %v658_v26, %v597_v48  ;;  %1077 = vmatpush.bf16.msra.mxu3 %v1609_v45  ;;  %v1597_v13 = vor.u32 %v1716_v7, %v1596_v4  ;;  %v2218_v14 = vpack.c.bf16 %v2208_v10, %v2206_v9 }
  0xe7   :  { %1055 = vmatpush.bf16.msra.mxu1 %v1529_v62  ;;  %v611_v25 = vor.u32 1.1754944e-38, %v610_v3  ;;  %v1585_v17 = vor.u32 %v1713_v23, %v1584_v22  ;;  %1066 = vmatpush.bf16.msra.mxu2 %v1569_v21  ;;  %v1701_v3 = vld [vmem:[#allocation13 + $0x10] sm:$0xf0] }
  0xe8   :  { %v557_v36 = vpop.f32.mrf.mxu0  ;;  %v602_v61 = vmul.f32 %v2184_v30, %v601_v52  ;;  %v662_v19 = vadd.f32 %v660_v0, %v367_v1 }
  0xe9   :  { %v615_v51 = vadd.f32 %v557_v36, %v355_v31  ;;  %v1557_v31 = vor.u32 %v1705_v27, %v1554_v28  ;;  %v1560_v36 = vld [vmem:[#allocation13 + $0x38] sm:$0xf] }
  0xea   :  { %v603_v2 = vadd.f32 %v2184_v30, %v602_v61  ;;  %1078 = vmatpush.bf16.msra.mxu3 %v1597_v13  ;;  %1056 = vmatmul.bf16.vlgmr.msra.gmra.mxu1 %v2218_v14  ;;  %v1561_v52 = vor.u32 %v1707_v44, %v1560_v36 }
  0xeb   :  { %v1749_v59 = vpop.eup %1748  ;;  %v1429_v60 = vmul.f32 -1.442695, %v615_v51  ;;  %v571_v11 = vpop.f32.mrf.mxu1  ;;  %1067 = vmatpush.bf16.msra.mxu2 %v1557_v31 }
  0xec   :  { %v2196_v63 = vadd.f32 1.0, %v1749_v59  ;;  %v607_v20 = vsel %vm2212_vm6, %v2184_v30, %v603_v2  ;;  %v659_v29 = vadd.f32 %v2171_v5, %v571_v11  ;;  %v368_v35 = vpop.f32.mrf.mxu2  ;;  %v1702_v30 = vld [vmem:[#allocation13 + $0x1c] sm:$0xf]  ;;  %v1704_v59 = vld [vmem:[#allocation13 + $0x28] sm:$0xf0] }
  0xed   :  { %v612_v32 = vsel %vm609_vm7, %v611_v25, %v607_v20  ;;  %v369_v5 = vadd.f32 %v368_v35, %v191_v6  ;;  %v1545_v26 = vor.u32 %v1702_v30, %v1542_v37  ;;  %v1549_v62 = vor.u32 %v1704_v59, %v1548_v58  ;;  %v1536_v2 = vld [vmem:[#allocation13 + $0x8] sm:$0xf] }
  0xee   :  { %1750 = vrcp.f32 %v2196_v63  ;;  %1079 = vmatpush.bf16.msra.mxu3 %v1585_v17  ;;  %v661_v43 = vmul.f32 %v659_v29, %v612_v32  ;;  %v635_v48 = vand.u32 2147483648, %v2196_v63  ;;  %v633_v51 = vand.u32 2147483647, %v2196_v63 }
  0xef   :  { %1752 = vpow2.f32 %v1429_v60  ;;  %1068 = vmatpush.bf16.msra.mxu2 %v1545_v26  ;;  %vm629_vm9 = vweird.f32 %v2196_v63  ;;  %v1537_v7 = vor.u32 %v1701_v3, %v1536_v2 }
  0xf0   :  { %1754 = vtanh.f32 %v662_v19  ;;  %v663_v54 = vadd.f32 %v661_v43, %v369_v5  ;;  %v636_v55 = vor.u32 1.1754944e-38, %v635_v48  ;;  %vm634_vm11 = vcmp.eq.f32.partialorder %v633_v51, 8.507059e+37 }
  0xf2   :  { %1080 = vmatpush.bf16.msra.mxu3 %v1573_v41 }
  0xf3   :  { %1069 = vmatpush.bf16.msra.mxu2 %v1533_v24 }
  0xf4   :  { %v1751_v38 = vpop.eup %1750 }
  0xf5   :  { %v1753_v39 = vpop.eup %1752  ;;  %v625_v40 = vmul.f32 %v1751_v38, %v2196_v63  ;;  %vm630_vm8 = vweird.f32 %v1751_v38 }
  0xf6   :  { %v623_v42 = vadd.f32 1.0, %v1753_v39  ;;  %v1755_v53 = vpop.eup %1754  ;;  %vm631_vm10 = vmor %vm629_vm9, %vm630_vm8  ;;  %1081 = vmatpush.bf16.msra.mxu3 %v1561_v52 }
  0xf7   :  { %v626_v45 = vsub.f32 1.0, %v625_v40  ;;  %v666_v57 = vsub.f32 %v2127_v16, %v1755_v53 }
  0xf8   :  { %1756 = vrcp.f32 %v623_v42  ;;  %v650_v8 = vand.u32 2147483648, %v623_v42  ;;  %v648_v16 = vand.u32 2147483647, %v623_v42  ;;  %vm644_vm13 = vweird.f32 %v623_v42 }
  0xf9   :  { %v627_v49 = vmul.f32 %v1751_v38, %v626_v45  ;;  %1758 = vtanh.f32 %v663_v54 }
  0xfa   :  { %1082 = vmatpush.bf16.msra.mxu3 %v1549_v62  ;;  %v651_v15 = vor.u32 1.1754944e-38, %v650_v8  ;;  %vm649_vm15 = vcmp.eq.f32.partialorder %v648_v16, 8.507059e+37 }
  0xfb   :  { %v628_v6 = vadd.f32 %v1751_v38, %v627_v49  ;;  %v1739_v49 = vld [vmem:[%s2270_s10] ss:$0 sm:$0xff]  ;;  %s2022_s10 = smov [#allocation15]  }
  0xfc   :  { %s1207_s27 = sshll.u32 %s2022_s10, 4  ;;  %s1208_s27 = int_to_ptr.vmem [resolvable:$true] %s1207_s27 }
  0xfd   :  { %v632_v56 = vsel %vm631_vm10, %v1751_v38, %v628_v6 }
  0xfe   :  { %v1757_v60 = vpop.eup %1756  ;;  %v637_v61 = vsel %vm634_vm11, %v636_v55, %v632_v56  ;;  %1083 = vmatpush.bf16.msra.mxu3 %v1537_v7 }
  0xff   :  { %v640_v0 = vmul.f32 %v1757_v60, %v623_v42  ;;  %v668_v1 = vmul.f32 %v666_v57, %v637_v61  ;;  %vm645_vm12 = vweird.f32 %v1757_v60  ;;  %v1759_v12 = vpop.eup %1758 }
 0x100   :  { %vm646_vm14 = vmor %vm644_vm13, %vm645_vm12  ;;  %v667_v19 = vsub.f32 %v2129_v18, %v1759_v12  ;;  %v2244_v18 = vld [vmem:[%s2268_s8] sm:$0x7] }
 0x101   :  { %v641_v4 = vsub.f32 1.0, %v640_v0  ;;  %v670_v63 = vadd.f32 %v1755_v53, %v668_v1  ;;  %v711_v25 = vperm.slane %v2244_v18, 0  ;;  %v712_v35 = vperm.slane %v2244_v18, 1 }
 0x102   :  { %v713_v57 = vperm.slane %v2244_v18, 2 }
 0x103   :  { %v642_v11 = vmul.f32 %v1757_v60, %v641_v4  ;;  %672 = vst [vmem:[#allocation14] sm:$0xff] %v670_v63 }
 0x105   :  { %v643_v13 = vadd.f32 %v1757_v60, %v642_v11 }
 0x107   :  { %v647_v50 = vsel %vm646_vm14, %v1757_v60, %v643_v13 }
 0x108   :  { %v652_v20 = vsel %vm649_vm15, %v651_v15, %v647_v50 }
 0x109   :  { %v669_v21 = vmul.f32 %v667_v19, %v652_v20 }
 0x10b   :  { %v671_v22 = vadd.f32 %v1759_v12, %v669_v21 }
 0x10d   :  { %v674_v23 = vpack.c.bf16 %v671_v22, %v670_v63  ;;  %673 = vst [vmem:[#allocation14 + $0x8] sm:$0xff] %v671_v22 }
 0x10e   :  { %1202 = dma.vmem_to_hbm [thread:$0]  %s1195_s25, 256, %s1197_s23, [#allocation4], %s2009_s29, %s2009_s29, %s2010_s30  }
 0x10f   :  { %853 = vmatmul.bf16.vlgmr.msrb.gmra.mxu2 %v674_v23  ;;  %867 = vmatmul.bf16.vlgmr.msrb.gmra.mxu3 %v674_v23 }
 0x110   :  { %881 = vmatmul.bf16.vlgmr.msra.gmra.mxu0 %v674_v23 }
 0x11f   :  { %1070 = vmatmul.bf16.vlgmr.msra.gmra.mxu2 %v2218_v14  ;;  %1084 = vmatmul.bf16.vlgmr.msra.gmra.mxu3 %v2218_v14 }
 0x167   :  { %v1057_v14 = vpop.f32.mrf.mxu1 }
 0x16f   :  { %v1059_v32 = vpop.f32.mrf.mxu1 }
 0x18d   :  { %v882_v24 = vpop.f32.mrf.mxu0 }
 0x18e   :  { %v883_v3 = vadd.f32 %v882_v24, %v713_v57 }
 0x192   :  { %v854_v17 = vpop.f32.mrf.mxu2  ;;  %v868_v31 = vpop.f32.mrf.mxu3 }
 0x193   :  { %v855_v27 = vadd.f32 %v854_v17, %v711_v25  ;;  %v869_v40 = vadd.f32 %v868_v31, %v712_v35 }
 0x195   :  { %v1090_v28 = vadd.f32 %v1057_v14, %v855_v27  ;;  %v884_v19 = vpop.f32.mrf.mxu0 }
 0x196   :  { %v885_v14 = vadd.f32 %v884_v19, %v713_v57 }
 0x197   :  { %v1622_v29 = vmul.f32 -1.442695, %v1090_v28 }
 0x199   :  { %1760 = vpow2.f32 %v1622_v29 }
 0x19a   :  { %v856_v33 = vpop.f32.mrf.mxu2  ;;  %v870_v43 = vpop.f32.mrf.mxu3 }
 0x19b   :  { %v857_v34 = vadd.f32 %v856_v33, %v711_v25  ;;  %v871_v45 = vadd.f32 %v870_v43, %v712_v35 }
 0x19d   :  { %v1091_v30 = vadd.f32 %v1059_v32, %v857_v34 }
 0x19f   :  { %v1761_v37 = vpop.eup %1760  ;;  %v1623_v38 = vmul.f32 -1.442695, %v1091_v30 }
 0x1a0   :  { %v1098_v39 = vadd.f32 1.0, %v1761_v37 }
 0x1a1   :  { %1762 = vpow2.f32 %v1623_v38 }
 0x1a2   :  { %1764 = vrcp.f32 %v1098_v39  ;;  %v1071_v41 = vpop.f32.mrf.mxu2  ;;  %v1085_v52 = vpop.f32.mrf.mxu3  ;;  %v1111_v53 = vand.u32 2147483648, %v1098_v39  ;;  %v1109_v55 = vand.u32 2147483647, %v1098_v39  ;;  %vm1105_vm1 = vweird.f32 %v1098_v39 }
 0x1a3   :  { %v1130_v42 = vadd.f32 %v1071_v41, %v869_v40  ;;  %v1174_v60 = vadd.f32 %v1739_v49, %v1085_v52 }
 0x1a4   :  { %v1112_v62 = vor.u32 1.1754944e-38, %v1111_v53  ;;  %vm1110_vm3 = vcmp.eq.f32.partialorder %v1109_v55, 8.507059e+37 }
 0x1a5   :  { %v1624_v5 = vmul.f32 -1.442695, %v1130_v42 }
 0x1a7   :  { %v1763_v26 = vpop.eup %1762  ;;  %1766 = vpow2.f32 %v1624_v5 }
 0x1a8   :  { %v1765_v36 = vpop.eup %1764  ;;  %v1099_v44 = vadd.f32 1.0, %v1763_v26 }
 0x1a9   :  { %v1101_v46 = vmul.f32 %v1765_v36, %v1098_v39  ;;  %vm1106_vm0 = vweird.f32 %v1765_v36 }
 0x1aa   :  { %1768 = vrcp.f32 %v1099_v44  ;;  %v1073_v47 = vpop.f32.mrf.mxu2  ;;  %vm1107_vm2 = vmor %vm1105_vm1, %vm1106_vm0  ;;  %v1126_v7 = vand.u32 2147483648, %v1099_v44  ;;  %v1124_v12 = vand.u32 2147483647, %v1099_v44  ;;  %v1087_v50 = vpop.f32.mrf.mxu3  ;;  %vm1120_vm5 = vweird.f32 %v1099_v44 }
 0x1ab   :  { %v1102_v48 = vsub.f32 1.0, %v1101_v46  ;;  %v1131_v51 = vadd.f32 %v1073_v47, %v871_v45  ;;  %v1175_v25 = vadd.f32 %v1739_v49, %v1087_v50 }
 0x1ac   :  { %v1127_v22 = vor.u32 1.1754944e-38, %v1126_v7  ;;  %vm1125_vm7 = vcmp.eq.f32.partialorder %v1124_v12, 8.507059e+37 }
 0x1ad   :  { %v1767_v54 = vpop.eup %1766  ;;  %v1103_v6 = vmul.f32 %v1765_v36, %v1102_v48  ;;  %v1625_v56 = vmul.f32 -1.442695, %v1131_v51 }
 0x1ae   :  { %v1138_v58 = vadd.f32 1.0, %v1767_v54 }
 0x1af   :  { %v1104_v59 = vadd.f32 %v1765_v36, %v1103_v6  ;;  %1770 = vpow2.f32 %v1625_v56 }
 0x1b0   :  { %v1769_v61 = vpop.eup %1768  ;;  %1772 = vrcp.f32 %v1138_v58  ;;  %v1151_v27 = vand.u32 2147483648, %v1138_v58  ;;  %v1149_v31 = vand.u32 2147483647, %v1138_v58  ;;  %vm1145_vm9 = vweird.f32 %v1138_v58 }
 0x1b1   :  { %v1108_v0 = vsel %vm1107_vm2, %v1765_v36, %v1104_v59  ;;  %v1116_v1 = vmul.f32 %v1769_v61, %v1099_v44  ;;  %vm1121_vm4 = vweird.f32 %v1769_v61 }
 0x1b2   :  { %v1113_v2 = vsel %vm1110_vm3, %v1112_v62, %v1108_v0  ;;  %vm1122_vm6 = vmor %vm1120_vm5, %vm1121_vm4  ;;  %v1152_v30 = vor.u32 1.1754944e-38, %v1151_v27  ;;  %vm1150_vm11 = vcmp.eq.f32.partialorder %v1149_v31, 8.507059e+37 }
 0x1b3   :  { %v1176_v4 = vmul.f32 %v1174_v60, %v1113_v2  ;;  %v1117_v63 = vsub.f32 1.0, %v1116_v1 }
 0x1b5   :  { %v1771_v8 = vpop.eup %1770  ;;  %v1178_v11 = vadd.f32 %v1176_v4, %v883_v3  ;;  %v1118_v16 = vmul.f32 %v1769_v61, %v1117_v63 }
 0x1b6   :  { %v1773_v13 = vpop.eup %1772  ;;  %v1139_v15 = vadd.f32 1.0, %v1771_v8 }
 0x1b7   :  { %v1141_v20 = vmul.f32 %v1773_v13, %v1138_v58  ;;  %1774 = vtanh.f32 %v1178_v11  ;;  %v1119_v21 = vadd.f32 %v1769_v61, %v1118_v16  ;;  %vm1146_vm8 = vweird.f32 %v1773_v13 }
 0x1b8   :  { %1776 = vrcp.f32 %v1139_v15  ;;  %vm1147_vm10 = vmor %vm1145_vm9, %vm1146_vm8  ;;  %v1166_v43 = vand.u32 2147483648, %v1139_v15  ;;  %v1164_v26 = vand.u32 2147483647, %v1139_v15  ;;  %vm1160_vm13 = vweird.f32 %v1139_v15 }
 0x1b9   :  { %v1142_v23 = vsub.f32 1.0, %v1141_v20  ;;  %v1123_v18 = vsel %vm1122_vm6, %v1769_v61, %v1119_v21 }
 0x1ba   :  { %v1128_v17 = vsel %vm1125_vm7, %v1127_v22, %v1123_v18  ;;  %v1167_v46 = vor.u32 1.1754944e-38, %v1166_v43  ;;  %vm1165_vm15 = vcmp.eq.f32.partialorder %v1164_v26, 8.507059e+37 }
 0x1bb   :  { %v1143_v28 = vmul.f32 %v1773_v13, %v1142_v23  ;;  %v1177_v29 = vmul.f32 %v1175_v25, %v1128_v17 }
 0x1bd   :  { %v1775_v33 = vpop.eup %1774  ;;  %v1179_v34 = vadd.f32 %v1177_v29, %v885_v14  ;;  %v1144_v32 = vadd.f32 %v1773_v13, %v1143_v28 }
 0x1be   :  { %v1777_v35 = vpop.eup %1776  ;;  %v1182_v37 = vsub.f32 %v2206_v9, %v1775_v33 }
 0x1bf   :  { %v1156_v38 = vmul.f32 %v1777_v35, %v1139_v15  ;;  %1778 = vtanh.f32 %v1179_v34  ;;  %v1148_v39 = vsel %vm1147_vm10, %v1773_v13, %v1144_v32  ;;  %vm1161_vm12 = vweird.f32 %v1777_v35 }
 0x1c0   :  { %v1153_v40 = vsel %vm1150_vm11, %v1152_v30, %v1148_v39  ;;  %vm1162_vm14 = vmor %vm1160_vm13, %vm1161_vm12 }
 0x1c1   :  { %v1157_v41 = vsub.f32 1.0, %v1156_v38  ;;  %v1184_v42 = vmul.f32 %v1182_v37, %v1153_v40 }
 0x1c3   :  { %v1158_v5 = vmul.f32 %v1777_v35, %v1157_v41  ;;  %v1186_v36 = vadd.f32 %v1775_v33, %v1184_v42 }
 0x1c5   :  { %v1779_v44 = vpop.eup %1778  ;;  %v1159_v45 = vadd.f32 %v1777_v35, %v1158_v5  ;;  %1188 = vst [vmem:[#allocation15] sm:$0xff] %v1186_v36 }
 0x1c6   :  { %v1183_v9 = vsub.f32 %v2208_v10, %v1779_v44 }
 0x1c7   :  { %v1163_v47 = vsel %vm1162_vm14, %v1777_v35, %v1159_v45 }
 0x1c8   :  { %v1168_v48 = vsel %vm1165_vm15, %v1167_v46, %v1163_v47 }
 0x1c9   :  { %v1185_v49 = vmul.f32 %v1183_v9, %v1168_v48 }
 0x1cb   :  { %v1187_v51 = vadd.f32 %v1779_v44, %v1185_v49 }
 0x1cd   :  { %1189 = vst [vmem:[#allocation15 + $0x8] sm:$0xff] %v1187_v51 }
 0x1ce   :  { %1215 = dma.vmem_to_hbm [thread:$0]  %s1208_s27, 256, %s1210_s14, [#allocation16], %s2009_s29, %s2009_s29, %s2010_s30  }
 0x1cf   :  { %2004 = dma.done.wait [#allocation4], 256  }
 0x1d0   :  { %2005 = vsyncadd [#allocation4], 4294967040 }
 0x1d1   :  { %2006 = dma.done.wait [#allocation16], 256  }
 0x1d2   :  { %2007 = vsyncadd [#allocation16], 4294967040 }
 0x1d3   :  { %1224 = vsyncpa [#allocation3], 1 }
 0x1d4   :  { %1225 = vsyncpa [#allocation6], 1 }
 0x1d5   :  { %1226 = vsyncpa [#allocation9], 1 }
 0x1d6   :  { %1227 = vsyncpa [#allocation12], 1 }
 0x1d7   :  { %1228 = vsyncpa [#allocation4], 1 }
 0x1d8   :  { %1229 = vsyncpa [#allocation16], 1 }

</bundles_post_ra>
